<compile_context>
chip_gen: v7x
topology: tpu7x:2x2x1
jax: 0.10.0
libtpu: 0.0.40
codegen_flags: <defaults>
</compile_context>

<pallas_src>
import functools

import jax
import jax.numpy as jnp
from jax.experimental import pallas as pl
from jax.experimental.pallas import tpu as pltpu

HIDDEN = 64
OUT_PAD = 128  # padded Q-output lane width (>= 128 and a multiple of 128)


def critic_kernel(s_ref, a_ref, w1s_ref, w1a_ref, b1_ref,
                  w2_ref, b2_ref, w3_ref, b3_ref, o_ref):
    # Layer 1 -- fused concat-matmul:
    #   cat([s, a], 1) @ W1 == s @ W1[:Ds] + a @ W1[Ds:]
    # Dot operands may arrive as bf16 (MXU path); accumulate in f32.
    h1 = (jnp.dot(s_ref[...], w1s_ref[...], preferred_element_type=jnp.float32)
          + jnp.dot(a_ref[...], w1a_ref[...], preferred_element_type=jnp.float32)
          + b1_ref[...])
    h1 = jnp.maximum(h1, 0.0)                      # ReLU in f32 (VPU)

    # Layer 2
    h2 = (jnp.dot(h1.astype(w2_ref.dtype), w2_ref[...],
                  preferred_element_type=jnp.float32)
          + b2_ref[...])
    h2 = jnp.maximum(h2, 0.0)

    # Layer 3 -- no activation. w3/b3 are zero-padded to OUT_PAD lanes so the
    # store below is lane-dense (unmasked vst); only lane 0 carries Q.
    q = (jnp.dot(h2.astype(w3_ref.dtype), w3_ref[...],
                 preferred_element_type=jnp.float32)
         + b3_ref[...])
    o_ref[...] = q.astype(o_ref.dtype)


@functools.partial(jax.jit, static_argnames=("mxu_bf16", "batch_tile"))
def critic_forward(state, action, params, *, mxu_bf16=True, batch_tile=512):
    """state: (B, state_dim) f32; action: (..., action_dim) f32 (reshaped)."""
    w1s, w1a = params["w1s"], params["w1a"]
    b1, w2, b2 = params["b1"], params["w2"], params["b2"]
    w3, b3 = params["w3"], params["b3"]

    action_dim = w1a.shape[0]
    action = action.reshape(-1, action_dim)        # action.view(-1, action_dim)
    B, Ds = state.shape
    Da = action.shape[1]

    # Zero-pad the last layer to OUT_PAD lanes => lane-dense output stores.
    w3p = jnp.zeros((HIDDEN, OUT_PAD), jnp.float32).at[:, : w3.shape[1]].set(w3)
    b3p = jnp.zeros((1, OUT_PAD), jnp.float32).at[:, : b3.shape[1]].set(b3)

    if mxu_bf16:
        # bf16 only on the MXU operand side; biases / ReLU stay f32.
        state = state.astype(jnp.bfloat16)
        action = action.astype(jnp.bfloat16)
        w1s, w1a, w2, w3p = (w.astype(jnp.bfloat16) for w in (w1s, w1a, w2, w3p))

    # Batch tile: full batch if small, otherwise `batch_tile`-row tiles
    # (double-buffered by the BlockSpec pipeline; weights stay resident via
    # constant index_map; a partial final tile is padded/masked by Pallas).
    TB = B if B <= batch_tile else batch_tile
    grid = (pl.cdiv(B, TB),)

    const = lambda shape: pl.BlockSpec(shape, lambda i: (0, 0))     # VMEM-resident
    batched = lambda cols: pl.BlockSpec((TB, cols), lambda i: (i, 0))

    out = pl.pallas_call(
        critic_kernel,
        out_shape=jax.ShapeDtypeStruct((B, OUT_PAD), jnp.float32),
        grid=grid,
        in_specs=[
            batched(Ds),                      # state tile follows the batch grid
            batched(Da),                      # action tile follows the batch grid
            const(w1s.shape), const(w1a.shape), const(b1.shape),
            const(w2.shape), const(b2.shape),
            const(w3p.shape), const(b3p.shape),
        ],
        out_specs=batched(OUT_PAD),
        compiler_params=pltpu.CompilerParams(
            dimension_semantics=("parallel",)),   # shard batch tiles across TCs (v7x)
    )(state, action, w1s, w1a, b1, w2, b2, w3p, b3p)

    return out[:, :1]                          # (B, 1) Q-values


def init_params(key, state_dim, action_dim):
    """PyTorch nn.Linear init: U(-1/sqrt(fan_in), 1/sqrt(fan_in)) for W and b."""
    dims = [(state_dim + action_dim, HIDDEN), (HIDDEN, HIDDEN), (HIDDEN, 1)]
    keys = jax.random.split(key, 2 * len(dims))
    raw = {}
    for i, (fan_in, fan_out) in enumerate(dims):
        bound = 1.0 / jnp.sqrt(jnp.float32(fan_in))
        raw[f"w{i + 1}"] = jax.random.uniform(
            keys[2 * i], (fan_in, fan_out), jnp.float32, -bound, bound)
        raw[f"b{i + 1}"] = jax.random.uniform(
            keys[2 * i + 1], (1, fan_out), jnp.float32, -bound, bound)
    # Split W1 by input so the kernel can fuse the concat into the first matmul.
    return {
        "w1s": raw["w1"][:state_dim],
        "w1a": raw["w1"][state_dim:],
        "b1": raw["b1"],
        "w2": raw["w2"], "b2": raw["b2"],
        "w3": raw["w3"], "b3": raw["b3"],
    }


def critic_reference(state, action, params, *, mxu_bf16=False):
    """Pure-JAX reference with the same (optional) bf16 operand casting."""
    action = action.reshape(-1, params["w1a"].shape[0])
    w1 = jnp.concatenate([params["w1s"], params["w1a"]], axis=0)
    x = jnp.concatenate([state, action], axis=1)
    cast = (lambda t: t.astype(jnp.bfloat16)) if mxu_bf16 else (lambda t: t)
    h1 = jnp.maximum(
        jnp.dot(cast(x), cast(w1), preferred_element_type=jnp.float32)
        + params["b1"], 0.0)
    h2 = jnp.maximum(
        jnp.dot(cast(h1), cast(params["w2"]), preferred_element_type=jnp.float32)
        + params["b2"], 0.0)
    return (jnp.dot(cast(h2), cast(params["w3"]),
                    preferred_element_type=jnp.float32)
            + params["b3"])


if __name__ == "__main__":
    key = jax.random.PRNGKey(0)
    k_param, k_state, k_action = jax.random.split(key, 3)

    batch = 8
    state_dim = 24
    action_dim = 8

    params = init_params(k_param, state_dim, action_dim)
    state = jax.random.normal(k_state, (batch, state_dim), jnp.float32)
    action = jax.random.normal(k_action, (batch, action_dim), jnp.float32)

    # f32 path: exact correctness check vs. pure-JAX reference.
    out_f32 = jax.block_until_ready(
        critic_forward(state, action, params, mxu_bf16=False))
    ref_f32 = critic_reference(state, action, params, mxu_bf16=False)
    assert out_f32.shape == (batch, 1)
    assert jnp.allclose(out_f32, ref_f32, atol=1e-5, rtol=1e-5)

    # bf16-MXU path (v5e/v6e/v7x): bf16 dot operands, f32 accumulate/ReLU/bias.
    out_bf16 = jax.block_until_ready(
        critic_forward(state, action, params, mxu_bf16=True))
    ref_bf16 = critic_reference(state, action, params, mxu_bf16=True)
    assert out_bf16.shape == (batch, 1)
    assert jnp.allclose(out_bf16, ref_bf16, atol=1e-2, rtol=1e-2)

    print("KERNEL_OK")
</pallas_src>

<mosaic_0001>
module attributes {stable_mosaic.version = 11 : i64} {
  func.func @critic_kernel(%arg0: i32, %arg1: memref<8x24xf32, #tpu.memory_space<vmem>>, %arg2: memref<8x8xf32, #tpu.memory_space<vmem>>, %arg3: memref<24x64xf32, #tpu.memory_space<vmem>>, %arg4: memref<8x64xf32, #tpu.memory_space<vmem>>, %arg5: memref<1x64xf32, #tpu.memory_space<vmem>>, %arg6: memref<64x64xf32, #tpu.memory_space<vmem>>, %arg7: memref<1x64xf32, #tpu.memory_space<vmem>>, %arg8: memref<64x128xf32, #tpu.memory_space<vmem>>, %arg9: memref<1x128xf32, #tpu.memory_space<vmem>>, %arg10: memref<8x128xf32, #tpu.memory_space<vmem>>) attributes {dimension_semantics = [#tpu.dimension_semantics<parallel>], iteration_bounds = array<i64: 1>, scalar_prefetch = 0 : i64, scratch_operands = 0 : i64, tpu.core_type = #tpu.core_type<tc>, window_params = [{transform_indices = @transform_0, window_bounds = array<i64: 8, 24>}, {transform_indices = @transform_1, window_bounds = array<i64: 8, 8>}, {pipeline_mode = #tpu.pipeline_mode<synchronous>, transform_indices = @transform_2, window_bounds = array<i64: 24, 64>}, {pipeline_mode = #tpu.pipeline_mode<synchronous>, transform_indices = @transform_3, window_bounds = array<i64: 8, 64>}, {pipeline_mode = #tpu.pipeline_mode<synchronous>, transform_indices = @transform_4, window_bounds = array<i64: 1, 64>}, {pipeline_mode = #tpu.pipeline_mode<synchronous>, transform_indices = @transform_5, window_bounds = array<i64: 64, 64>}, {pipeline_mode = #tpu.pipeline_mode<synchronous>, transform_indices = @transform_6, window_bounds = array<i64: 1, 64>}, {pipeline_mode = #tpu.pipeline_mode<synchronous>, transform_indices = @transform_7, window_bounds = array<i64: 64, 128>}, {pipeline_mode = #tpu.pipeline_mode<synchronous>, transform_indices = @transform_8, window_bounds = array<i64: 1, 128>}, {transform_indices = @transform_9, window_bounds = array<i64: 8, 128>}]} {
    %c0 = arith.constant 0 : index
    %c0_0 = arith.constant 0 : index
    %0 = vector.load %arg1[%c0, %c0_0] : memref<8x24xf32, #tpu.memory_space<vmem>>, vector<8x24xf32>
    %c0_1 = arith.constant 0 : index
    %c0_2 = arith.constant 0 : index
    %1 = vector.load %arg3[%c0_1, %c0_2] : memref<24x64xf32, #tpu.memory_space<vmem>>, vector<24x64xf32>
    %cst = arith.constant dense<0.000000e+00> : vector<8x64xf32>
    %2 = tpu.matmul %0, %1, %cst {dimension_numbers = #tpu.dot_dimension_numbers<[1], [0], [0], [1], [0, 0, 1, 1], [], []>} : vector<8x24xf32>, vector<24x64xf32>, vector<8x64xf32> -> vector<8x64xf32>
    %c0_3 = arith.constant 0 : index
    %c0_4 = arith.constant 0 : index
    %3 = vector.load %arg2[%c0_3, %c0_4] : memref<8x8xf32, #tpu.memory_space<vmem>>, vector<8x8xf32>
    %c0_5 = arith.constant 0 : index
    %c0_6 = arith.constant 0 : index
    %4 = vector.load %arg4[%c0_5, %c0_6] : memref<8x64xf32, #tpu.memory_space<vmem>>, vector<8x64xf32>
    %cst_7 = arith.constant dense<0.000000e+00> : vector<8x64xf32>
    %5 = tpu.matmul %3, %4, %cst_7 {dimension_numbers = #tpu.dot_dimension_numbers<[1], [0], [0], [1], [0, 0, 1, 1], [], []>} : vector<8x8xf32>, vector<8x64xf32>, vector<8x64xf32> -> vector<8x64xf32>
    %6 = arith.addf %2, %5 : vector<8x64xf32>
    %c0_8 = arith.constant 0 : index
    %c0_9 = arith.constant 0 : index
    %7 = vector.load %arg5[%c0_8, %c0_9] : memref<1x64xf32, #tpu.memory_space<vmem>>, vector<1x64xf32>
    %8 = vector.broadcast %7 : vector<1x64xf32> to vector<8x64xf32>
    %9 = arith.addf %6, %8 : vector<8x64xf32>
    %cst_10 = arith.constant 0.000000e+00 : f32
    %10 = vector.broadcast %cst_10 : f32 to vector<8x64xf32>
    %11 = arith.maximumf %9, %10 : vector<8x64xf32>
    %c0_11 = arith.constant 0 : index
    %c0_12 = arith.constant 0 : index
    %12 = vector.load %arg6[%c0_11, %c0_12] : memref<64x64xf32, #tpu.memory_space<vmem>>, vector<64x64xf32>
    %cst_13 = arith.constant dense<0.000000e+00> : vector<8x64xf32>
    %13 = tpu.matmul %11, %12, %cst_13 {dimension_numbers = #tpu.dot_dimension_numbers<[1], [0], [0], [1], [0, 0, 1, 1], [], []>} : vector<8x64xf32>, vector<64x64xf32>, vector<8x64xf32> -> vector<8x64xf32>
    %c0_14 = arith.constant 0 : index
    %c0_15 = arith.constant 0 : index
    %14 = vector.load %arg7[%c0_14, %c0_15] : memref<1x64xf32, #tpu.memory_space<vmem>>, vector<1x64xf32>
    %15 = vector.broadcast %14 : vector<1x64xf32> to vector<8x64xf32>
    %16 = arith.addf %13, %15 : vector<8x64xf32>
    %cst_16 = arith.constant 0.000000e+00 : f32
    %17 = vector.broadcast %cst_16 : f32 to vector<8x64xf32>
    %18 = arith.maximumf %16, %17 : vector<8x64xf32>
    %c0_17 = arith.constant 0 : index
    %c0_18 = arith.constant 0 : index
    %19 = vector.load %arg8[%c0_17, %c0_18] : memref<64x128xf32, #tpu.memory_space<vmem>>, vector<64x128xf32>
    %cst_19 = arith.constant dense<0.000000e+00> : vector<8x128xf32>
    %20 = tpu.matmul %18, %19, %cst_19 {dimension_numbers = #tpu.dot_dimension_numbers<[1], [0], [0], [1], [0, 0, 1, 1], [], []>} : vector<8x64xf32>, vector<64x128xf32>, vector<8x128xf32> -> vector<8x128xf32>
    %c0_20 = arith.constant 0 : index
    %c0_21 = arith.constant 0 : index
    %21 = vector.load %arg9[%c0_20, %c0_21] : memref<1x128xf32, #tpu.memory_space<vmem>>, vector<1x128xf32>
    %22 = vector.broadcast %21 : vector<1x128xf32> to vector<8x128xf32>
    %23 = arith.addf %20, %22 : vector<8x128xf32>
    %c0_22 = arith.constant 0 : index
    %c0_23 = arith.constant 0 : index
    %24 = vector.load %arg10[%c0_22, %c0_23] : memref<8x128xf32, #tpu.memory_space<vmem>>, vector<8x128xf32>
    tpu.vector_store %arg10[%c0_22, %c0_23], %23 {strides = array<i32>} : memref<8x128xf32, #tpu.memory_space<vmem>>, vector<8x128xf32>,
    return
  }
  func.func @transform_0(%arg0: i32) -> (i32, i32) {
    %c0_i32 = arith.constant 0 : i32
    %c0_i32_0 = arith.constant 0 : i32
    return %arg0, %c0_i32 : i32, i32
  }
  func.func @transform_1(%arg0: i32) -> (i32, i32) {
    %c0_i32 = arith.constant 0 : i32
    %c0_i32_0 = arith.constant 0 : i32
    return %arg0, %c0_i32 : i32, i32
  }
  func.func @transform_2(%arg0: i32) -> (i32, i32) {
    %c0_i32 = arith.constant 0 : i32
    %c0_i32_0 = arith.constant 0 : i32
    %c0_i32_1 = arith.constant 0 : i32
    return %c0_i32, %c0_i32_0 : i32, i32
  }
  func.func @transform_3(%arg0: i32) -> (i32, i32) {
    %c0_i32 = arith.constant 0 : i32
    %c0_i32_0 = arith.constant 0 : i32
    %c0_i32_1 = arith.constant 0 : i32
    return %c0_i32, %c0_i32_0 : i32, i32
  }
  func.func @transform_4(%arg0: i32) -> (i32, i32) {
    %c0_i32 = arith.constant 0 : i32
    %c0_i32_0 = arith.constant 0 : i32
    %c0_i32_1 = arith.constant 0 : i32
    return %c0_i32, %c0_i32_0 : i32, i32
  }
  func.func @transform_5(%arg0: i32) -> (i32, i32) {
    %c0_i32 = arith.constant 0 : i32
    %c0_i32_0 = arith.constant 0 : i32
    %c0_i32_1 = arith.constant 0 : i32
    return %c0_i32, %c0_i32_0 : i32, i32
  }
  func.func @transform_6(%arg0: i32) -> (i32, i32) {
    %c0_i32 = arith.constant 0 : i32
    %c0_i32_0 = arith.constant 0 : i32
    %c0_i32_1 = arith.constant 0 : i32
    return %c0_i32, %c0_i32_0 : i32, i32
  }
  func.func @transform_7(%arg0: i32) -> (i32, i32) {
    %c0_i32 = arith.constant 0 : i32
    %c0_i32_0 = arith.constant 0 : i32
    %c0_i32_1 = arith.constant 0 : i32
    return %c0_i32, %c0_i32_0 : i32, i32
  }
  func.func @transform_8(%arg0: i32) -> (i32, i32) {
    %c0_i32 = arith.constant 0 : i32
    %c0_i32_0 = arith.constant 0 : i32
    %c0_i32_1 = arith.constant 0 : i32
    return %c0_i32, %c0_i32_0 : i32, i32
  }
  func.func @transform_9(%arg0: i32) -> (i32, i32) {
    %c0_i32 = arith.constant 0 : i32
    %c0_i32_0 = arith.constant 0 : i32
    return %arg0, %c0_i32 : i32, i32
  }
}

</mosaic_0001>

<bundles_post_ra>
// kernel: critic_forward.1
= control target key start
LH: loop header
LB: loop body
LE: loop exit
PB: predicated region body
PF: predicated region fallthrough
CT: control target
= control target key end

     0   :  { %vm38_vm0 = vcmask 64512   ;;  %v491_v0 = vmov 0.0|0.0   ;;  %v492_v3 = vmov 0.0   ;;  %vm493_vm1 = vmmov 0   ;;  %s626_s2 = inlined_call_operand.vmem [shape: f32[24,64], index: 2, kind: input, shape index: {}]   ;;  %s627_s3 = inlined_call_operand.vmem [shape: f32[8,64], index: 3, kind: input, shape index: {}]   ;;  %s628_s1 = inlined_call_operand.vmem [shape: f32[8,8], index: 1, kind: input, shape index: {}]   ;;  %s629_s5 = inlined_call_operand.vmem [shape: f32[64,64], index: 5, kind: input, shape index: {}]   ;;  %s630_s0 = inlined_call_operand.vmem [shape: f32[8,24], index: 0, kind: input, shape index: {}]   ;;  %s631_s7 = inlined_call_operand.vmem [shape: f32[64,128], index: 7, kind: input, shape index: {}]   ;;  %s632_s4 = inlined_call_operand.vmem [shape: f32[1,64], index: 4, kind: input, shape index: {}]   ;;  %s633_s6 = inlined_call_operand.vmem [shape: f32[1,64], index: 6, kind: input, shape index: {}]   ;;  %s634_s8 = inlined_call_operand.vmem [shape: f32[1,128], index: 8, kind: input, shape index: {}]   ;;  %s635_s9 = inlined_call_operand.vmem [shape: f32[8,128], index: 9, kind: output, shape index: {}]  }
   0x1   :  { %461 = vmatprep.subr.bf16.mxu1 %v491_v0  ;;  %v33_v1 = vld [vmem:[%s626_s2] sm:$0xff]  ;;  %v34_v2 = vld [vmem:[%s626_s2 + $0x8] sm:$0xff]  ;;  %409 = vmatprep.subr.mxu0 %v492_v3  ;;  %v197_v9 = vld [vmem:[%s629_s5 + $0x10] sm:$0xff]  ;;  %vm112_vm2 = vcmask 195584   ;;  %vm210_vm3 = vcmask 523264  }
   0x2   :  { %v37_v4 = vld [vmem:[%s627_s3] sm:$0xff]  ;;  %v462_v5 = vpack.c.bf16 %v34_v2, %v33_v1  ;;  %411 = vmatprep.mubr.msk.f32.mxu0 %vm493_vm1, %v492_v3  ;;  %420 = vmatprep.mubr.msk.f32.mxu1 %vm493_vm1, %v492_v3  ;;  %v196_v8 = vld [vmem:[%s629_s5 + $0x8] sm:$0xff]  ;;  %v198_v11 = vld [vmem:[%s629_s5 + $0x18] sm:$0xff] }
   0x3   :  { %410 = vmatpush3.msra.mxu0 %v37_v4  ;;  %v36_v6 = vld [vmem:[%s628_s1] sm:$0xff]  ;;  %v35_v12 = vld [vmem:[%s626_s2 + $0x10] sm:$0xff]  ;;  %v468_v14 = vpack.c.bf16 %v198_v11, %v197_v9  ;;  %v200_v16 = vld [vmem:[%s629_s5 + $0x28] sm:$0xff] }
   0x4   :  { %412 = vmatmul.mubr.msk.f32.vlgmr.msra.gmra.mrb[0].mxu0 %vm38_vm0, %v36_v6  ;;  %v195_v7 = vld [vmem:[%s629_s5] sm:$0xff]  ;;  %463 = vmatpush3.bf16.msra.mxu1 %v462_v5  ;;  %v201_v18 = vld [vmem:[%s629_s5 + $0x30] sm:$0xff]  ;;  %v202_v19 = vld [vmem:[%s629_s5 + $0x38] sm:$0xff] }
   0x5   :  { %464 = vmatprep.subr.bf16.mxu0 %v491_v0  ;;  %v465_v10 = vpack.c.bf16 %v196_v8, %v195_v7  ;;  %418 = vmatprep.subr.mxu1 %v492_v3  ;;  %v32_v13 = vld [vmem:[%s630_s0] sm:$0xff]  ;;  %v474_v20 = vpack.c.bf16 %v202_v19, %v201_v18  ;;  %v286_v22 = vld [vmem:[%s631_s7 + $0x8] sm:$0xff]  ;;  %v287_v23 = vld [vmem:[%s631_s7 + $0x10] sm:$0xff] }
   0x6   :  { %439 = vmatprep.mubr.msk.f32.mxu0 %vm493_vm1, %v492_v3  ;;  %v199_v15 = vld [vmem:[%s629_s5 + $0x20] sm:$0xff]  ;;  %v288_v25 = vld [vmem:[%s631_s7 + $0x18] sm:$0xff]  ;;  %v290_v28 = vld [vmem:[%s631_s7 + $0x28] sm:$0xff] }
   0x7   :  { %466 = vmatpush3.bf16.msra.mxu0 %v465_v10  ;;  %v471_v17 = vpack.c.bf16 %v200_v16, %v199_v15  ;;  %v285_v21 = vld [vmem:[%s631_s7] sm:$0xff]  ;;  %v480_v26 = vpack.c.bf16 %v288_v25, %v287_v23  ;;  %v291_v38 = vld [vmem:[%s631_s7 + $0x30] sm:$0xff]  ;;  %v292_v39 = vld [vmem:[%s631_s7 + $0x38] sm:$0xff] }
   0x8   :  { %467 = vmatprep.subr.bf16.mxu0 %v491_v0  ;;  %419 = vmatpush3.msra.mxu1 %v35_v12  ;;  %v477_v24 = vpack.c.bf16 %v286_v22, %v285_v21  ;;  %v289_v27 = vld [vmem:[%s631_s7 + $0x20] sm:$0xff]  ;;  %v486_v40 = vpack.c.bf16 %v292_v39, %v291_v38 }
   0x9   :  { %421 = vmatmul.mubr.msk.f32.vlgmr.msra.gmra.mrb[0].mxu1 %vm112_vm2, %v32_v13  ;;  %476 = vmatprep.subr.bf16.mxu1 %v491_v0  ;;  %v483_v29 = vpack.c.bf16 %v290_v28, %v289_v27  ;;  %v380_v33 = vld [vmem:[%s632_s4] ss:$0 sm:$0xff] }
   0xa   :  { %458 = vmatprep.mubr.msk.f32.mxu1 %vm493_vm1, %v492_v3  ;;  %478 = vmatpush3.bf16.msra.mxu1 %v477_v24  ;;  %v381_v41 = vld [vmem:[%s633_s6] ss:$0 sm:$0xff] }
   0xb   :  { %469 = vmatpush3.bf16.msra.mxu0 %v468_v14  ;;  %479 = vmatprep.subr.bf16.mxu1 %v491_v0  ;;  %v383_v46 = vld [vmem:[%s634_s8] ss:$0 sm:$0xff] }
   0xc   :  { %470 = vmatprep.subr.bf16.mxu0 %v491_v0 }
   0xe   :  { %481 = vmatpush3.bf16.msra.mxu1 %v480_v26 }
   0xf   :  { %472 = vmatpush3.bf16.msra.mxu0 %v471_v17  ;;  %482 = vmatprep.subr.bf16.mxu1 %v491_v0 }
  0x10   :  { %473 = vmatprep.subr.bf16.mxu0 %v491_v0 }
  0x12   :  { %484 = vmatpush3.bf16.msra.mxu1 %v483_v29 }
  0x13   :  { %475 = vmatpush3.bf16.msra.mxu0 %v474_v20  ;;  %485 = vmatprep.subr.bf16.mxu1 %v491_v0 }
  0x16   :  { %487 = vmatpush3.bf16.msra.mxu1 %v486_v40 }
  0xd7   :  { %v108_v30 = vpop.f32.mrb[0].mxu0 }
  0xd8   :  { %v413_v31 = vpop.f32.mrb[1].mxu0 }
  0xdc   :  { %v182_v32 = vpop.f32.mrb[0].mxu1 }
  0xdd   :  { %v183_v34 = vadd.f32 %v182_v32, %v108_v30  ;;  %v422_v35 = vpop.f32.mrb[1].mxu1 }
  0xdf   :  { %v193_v36 = vadd.f32 %v380_v33, %v183_v34 }
  0xe1   :  { %v194_v37 = vmax.f32 %v193_v36, 0.0 }
  0xe3   :  { %440 = vmatmul.mubr.msk.f32.vlgmr.msra.gmra.mrb[2].mxu0 %vm210_vm3, %v194_v37 }
 0x1b6   :  { %v280_v42 = vpop.f32.mrb[2].mxu0 }
 0x1b7   :  { %v281_v43 = vadd.f32 %v381_v41, %v280_v42  ;;  %v441_v44 = vpop.f32.mrb[3].mxu0 }
 0x1b9   :  { %v284_v45 = vmax.f32 %v281_v43, 0.0 }
 0x1bb   :  { %459 = vmatmul.mubr.msk.f32.vlgmr.msra.gmra.mrb[2].mxu1 %vm210_vm3, %v284_v45 }
 0x28e   :  { %v369_v47 = vpop.f32.mrb[2].mxu1 }
 0x28f   :  { %v370_v48 = vadd.f32 %v383_v46, %v369_v47  ;;  %v460_v49 = vpop.f32.mrb[3].mxu1 }
 0x291   :  { %373 = vst [vmem:[%s635_s9] sm:$0xff] %v370_v48 }

</bundles_post_ra>
